<compile_context>
chip_gen: v7x
topology: tpu7x:2x2x1
jax: 0.10.0
libtpu: 0.0.40
codegen_flags: <defaults>
</compile_context>

<pallas_src>
import jax
import jax.numpy as jnp
from jax.experimental import pallas as pl
from jax.experimental.pallas import tpu as pltpu


# Large-but-finite mask value (avoids inf - inf -> NaN if a row/tile ends up
# fully masked under tiling/padding).
_MASK_VALUE = -0.7 * float(jnp.finfo(jnp.float32).max)
_VMEM_LIMIT = 32 * 1024 * 1024  # explicit scoped-VMEM cap, safe on v5e/v6e/v7x


def _fit_tile(dim: int, target: int) -> int:
    """Largest legal tile: `target` if it divides `dim`, else the full dim."""
    if dim >= target and dim % target == 0:
        return target
    return dim


# ---------------------------------------------------------------------------
# Tiled linear kernel:  y = x @ W^T + b     (weights passed pre-transposed)
# ---------------------------------------------------------------------------
def _linear_kernel(x_ref, w_ref, b_ref, o_ref, acc_ref):
    @pl.when(pl.program_id(2) == 0)
    def _init():
        acc_ref[...] = jnp.zeros_like(acc_ref)

    # MXU matmul in the operand dtype (bf16 for peak), f32 accumulation.
    acc_ref[...] += jnp.dot(x_ref[...], w_ref[...],
                            preferred_element_type=jnp.float32)

    @pl.when(pl.program_id(2) == pl.num_programs(2) - 1)
    def _finalize():
        o_ref[...] = (acc_ref[...] + b_ref[...].astype(jnp.float32)
                      ).astype(o_ref.dtype)


def _linear(x, w_t, b, *, tm=256, tn=256, tk=512):
    M, K = x.shape
    _, N = w_t.shape
    tm, tn, tk = _fit_tile(M, tm), _fit_tile(N, tn), _fit_tile(K, tk)
    grid = (M // tm, N // tn, K // tk)
    return pl.pallas_call(
        _linear_kernel,
        out_shape=jax.ShapeDtypeStruct((M, N), x.dtype),
        grid_spec=pltpu.PrefetchScalarGridSpec(
            num_scalar_prefetch=0,
            grid=grid,
            in_specs=[
                pl.BlockSpec((tm, tk), lambda i, j, k: (i, k)),   # x tile
                pl.BlockSpec((tk, tn), lambda i, j, k: (k, j)),   # W^T tile (streams)
                pl.BlockSpec((1, tn), lambda i, j, k: (0, j)),    # bias tile (tiny)
            ],
            out_specs=pl.BlockSpec((tm, tn), lambda i, j, k: (i, j)),
            scratch_shapes=[pltpu.VMEM((tm, tn), jnp.float32)],
        ),
        compiler_params=pltpu.CompilerParams(
            dimension_semantics=("parallel", "parallel", "arbitrary"),
            vmem_limit_bytes=_VMEM_LIMIT),
    )(x, w_t, b)


# ---------------------------------------------------------------------------
# Flash-attention (causal) kernel: grid = (B*H, q_tiles, kv_tiles)
# ---------------------------------------------------------------------------
def _flash_attention_kernel(q_ref, k_ref, v_ref, o_ref, m_sc, l_sc, acc_sc):
    _, tq, d_h = q_ref.shape
    tk = k_ref.shape[1]
    qi = pl.program_id(1)
    ki = pl.program_id(2)

    @pl.when(ki == 0)
    def _init():
        m_sc[...] = jnp.full_like(m_sc, -jnp.inf)
        l_sc[...] = jnp.zeros_like(l_sc)
        acc_sc[...] = jnp.zeros_like(acc_sc)

    q_start = qi * tq
    k_start = ki * tk

    # Skip KV tiles that lie entirely above the causal diagonal.
    @pl.when(k_start < q_start + tq)
    def _compute():
        scale = 1.0 / (d_h ** 0.5)
        q = q_ref[0] * scale                     # fold scale into Q: O(tq*d_h)
        k = k_ref[0]
        # s[i, j] = sum_d q[i, d] * k[j, d]  ('nt' contraction, no transpose op)
        s = jax.lax.dot_general(q, k, (((1,), (1,)), ((), ())),
                                preferred_element_type=jnp.float32)  # (tq, tk)

        rows = q_start + jax.lax.broadcasted_iota(jnp.int32, (tq, tk), 0)
        cols = k_start + jax.lax.broadcasted_iota(jnp.int32, (tq, tk), 1)
        s = jnp.where(cols > rows, _MASK_VALUE, s)

        m_prev = m_sc[...]                                      # (tq, 1)
        m_new = jnp.maximum(m_prev, jnp.max(s, axis=-1, keepdims=True))
        alpha = jnp.exp(m_prev - m_new)
        p = jnp.exp(s - m_new)                                  # (tq, tk)
        l_sc[...] = alpha * l_sc[...] + jnp.sum(p, axis=-1, keepdims=True)
        acc_sc[...] = alpha * acc_sc[...] + jnp.dot(
            p.astype(v_ref.dtype), v_ref[0],
            preferred_element_type=jnp.float32)
        m_sc[...] = m_new

    @pl.when(ki == pl.num_programs(2) - 1)
    def _finalize():
        # Exact reciprocal on a (tq, 1) vector is negligible; switch to
        # approx=True (EUP vrcp) if looser validation tolerances are OK.
        inv_l = pl.reciprocal(l_sc[...], approx=False)
        o_ref[0] = (acc_sc[...] * inv_l).astype(o_ref.dtype)


def _flash_attention(q, k, v, *, tq=128, tk=128):
    BH, T, d_h = q.shape
    tq, tk = _fit_tile(T, tq), _fit_tile(T, tk)
    grid = (BH, T // tq, T // tk)
    return pl.pallas_call(
        _flash_attention_kernel,
        out_shape=jax.ShapeDtypeStruct((BH, T, d_h), q.dtype),
        grid_spec=pltpu.PrefetchScalarGridSpec(
            num_scalar_prefetch=0,
            grid=grid,
            in_specs=[
                pl.BlockSpec((1, tq, d_h), lambda bh, qi, ki: (bh, qi, 0)),
                pl.BlockSpec((1, tk, d_h), lambda bh, qi, ki: (bh, ki, 0)),
                pl.BlockSpec((1, tk, d_h), lambda bh, qi, ki: (bh, ki, 0)),
            ],
            out_specs=pl.BlockSpec((1, tq, d_h), lambda bh, qi, ki: (bh, qi, 0)),
            scratch_shapes=[
                pltpu.VMEM((tq, 1), jnp.float32),    # running max m
                pltpu.VMEM((tq, 1), jnp.float32),    # running denom l
                pltpu.VMEM((tq, d_h), jnp.float32),  # output accumulator
            ],
        ),
        compiler_params=pltpu.CompilerParams(
            dimension_semantics=("parallel", "parallel", "arbitrary"),
            vmem_limit_bytes=_VMEM_LIMIT),
    )(q, k, v)


# ---------------------------------------------------------------------------
# Full multi-head attention forward
# ---------------------------------------------------------------------------
def multi_head_attention(x, params, n_heads, *, tq=128, tk=128):
    """x: (B, T, d_e). Weights are pre-transposed: y = x @ W^T + b."""
    B, T, d_e = x.shape
    assert d_e % n_heads == 0
    d_h = d_e // n_heads

    x2 = x.reshape(B * T, d_e)
    q = _linear(x2, params["wq_t"], params["bq"])
    k = _linear(x2, params["wk_t"], params["bk"])
    v = _linear(x2, params["wv_t"], params["bv"])

    # Head split is layout plumbing in the wrapper (heads become a grid axis).
    def split_heads(t):
        return (t.reshape(B, T, n_heads, d_h)
                 .transpose(0, 2, 1, 3)
                 .reshape(B * n_heads, T, d_h))

    ctx = _flash_attention(split_heads(q), split_heads(k), split_heads(v),
                           tq=tq, tk=tk)

    ctx = (ctx.reshape(B, n_heads, T, d_h)
              .transpose(0, 2, 1, 3)
              .reshape(B * T, d_e))
    out = _linear(ctx, params["wo_t"], params["bo"])
    return out.reshape(B, T, d_e)


def reference_mha(x, params, n_heads):
    """Pure-JAX reference mirroring the PyTorch forward."""
    B, T, d_e = x.shape
    d_h = d_e // n_heads
    q = x @ params["wq_t"] + params["bq"]
    k = x @ params["wk_t"] + params["bk"]
    v = x @ params["wv_t"] + params["bv"]
    q = q.reshape(B, T, n_heads, d_h).transpose(0, 2, 1, 3)
    k = k.reshape(B, T, n_heads, d_h).transpose(0, 2, 1, 3)
    v = v.reshape(B, T, n_heads, d_h).transpose(0, 2, 1, 3)
    scores = jnp.einsum("bhqd,bhkd->bhqk", q, k)
    mask = jnp.triu(jnp.ones((T, T), dtype=bool), k=1)
    scores = jnp.where(mask, -jnp.inf, scores)
    w = jax.nn.softmax(scores / d_h ** 0.5, axis=-1)
    ctx = jnp.einsum("bhqk,bhkd->bhqd", w, v).transpose(0, 2, 1, 3).reshape(B, T, d_e)
    return ctx @ params["wo_t"] + params["bo"]


if __name__ == "__main__":
    config = dict(d_e=32, n_heads=4, context_length=8, qkv_bias=False)
    B, T, d_e = 2, config["context_length"], config["d_e"]
    n_heads = config["n_heads"]

    key = jax.random.PRNGKey(0)
    kx, kq, kk, kv, ko, kbo = jax.random.split(key, 6)

    x = jax.random.normal(kx, (B, T, d_e), dtype=jnp.float32)

    # nn.Linear weights are (out, in); we pass W^T = (in, out).
    init = lambda k: jax.random.normal(k, (d_e, d_e), dtype=jnp.float32) * 0.02
    zeros_b = jnp.zeros((1, d_e), dtype=jnp.float32)
    params = {
        "wq_t": init(kq), "wk_t": init(kk), "wv_t": init(kv), "wo_t": init(ko),
        # qkv_bias=False -> zero biases (identical semantics to no bias)
        "bq": zeros_b, "bk": zeros_b, "bv": zeros_b,
        "bo": jax.random.normal(kbo, (1, d_e), dtype=jnp.float32) * 0.02,
    }

    # f32 run: tight comparison against the pure-JAX reference.
    out = jax.block_until_ready(multi_head_attention(x, params, n_heads))
    ref = reference_mha(x, params, n_heads)
    assert out.shape == (B, T, d_e)
    assert jnp.allclose(out, ref, atol=1e-5, rtol=1e-5), "f32 mismatch vs reference"

    # bf16 fast path (bf16 MXU operands, f32 accumulation): compare against a
    # reference computed with the same bf16-rounded operands, looser tolerance.
    params_bf16 = dict(params)
    for name in ("wq_t", "wk_t", "wv_t", "wo_t"):
        params_bf16[name] = params[name].astype(jnp.bfloat16)
    x_bf16 = x.astype(jnp.bfloat16)
    out_bf16 = jax.block_until_ready(
        multi_head_attention(x_bf16, params_bf16, n_heads))
    params_rounded = {kname: val.astype(jnp.float32)
                      for kname, val in params_bf16.items()}
    ref_bf16 = reference_mha(x_bf16.astype(jnp.float32), params_rounded, n_heads)
    assert jnp.allclose(out_bf16.astype(jnp.float32), ref_bf16,
                        atol=1e-2, rtol=1e-2), "bf16 mismatch vs reference"

    print("KERNEL_OK")
</pallas_src>

<mosaic_0001>
module attributes {stable_mosaic.version = 11 : i64} {
  func.func @_linear_kernel(%arg0: i32, %arg1: i32, %arg2: i32, %arg3: memref<16x32xf32, #tpu.memory_space<vmem>>, %arg4: memref<32x32xf32, #tpu.memory_space<vmem>>, %arg5: memref<1x32xf32, #tpu.memory_space<vmem>>, %arg6: memref<16x32xf32, #tpu.memory_space<vmem>>, %arg7: memref<16x32xf32, #tpu.memory_space<vmem>>) attributes {dimension_semantics = [#tpu.dimension_semantics<parallel>, #tpu.dimension_semantics<parallel>, #tpu.dimension_semantics<arbitrary>], iteration_bounds = array<i64: 1, 1, 1>, scalar_prefetch = 0 : i64, scratch_operands = 1 : i64, tpu.core_type = #tpu.core_type<tc>, window_params = [{transform_indices = @transform_0, window_bounds = array<i64: 16, 32>}, {transform_indices = @transform_1, window_bounds = array<i64: 32, 32>}, {transform_indices = @transform_2, window_bounds = array<i64: 1, 32>}, {transform_indices = @transform_3, window_bounds = array<i64: 16, 32>}]} {
    %c0_i32 = arith.constant 0 : i32
    %0 = arith.cmpi eq, %arg2, %c0_i32 : i32
    %1 = arith.extui %0 : i1 to i32
    %c0_i32_0 = arith.constant 0 : i32
    %2 = arith.cmpi ne, %1, %c0_i32_0 : i32
    scf.if %2 {
      %cst_10 = arith.constant 0.000000e+00 : f32
      %12 = vector.broadcast %cst_10 : f32 to vector<16x32xf32>
      %c0_11 = arith.constant 0 : index
      %c0_12 = arith.constant 0 : index
      %13 = vector.load %arg7[%c0_11, %c0_12] : memref<16x32xf32, #tpu.memory_space<vmem>>, vector<16x32xf32>
      tpu.vector_store %arg7[%c0_11, %c0_12], %12 {strides = array<i32>} : memref<16x32xf32, #tpu.memory_space<vmem>>, vector<16x32xf32>,
    } else {
    }
    %c0 = arith.constant 0 : index
    %c0_1 = arith.constant 0 : index
    %3 = vector.load %arg7[%c0, %c0_1] : memref<16x32xf32, #tpu.memory_space<vmem>>, vector<16x32xf32>
    %c0_2 = arith.constant 0 : index
    %c0_3 = arith.constant 0 : index
    %4 = vector.load %arg3[%c0_2, %c0_3] : memref<16x32xf32, #tpu.memory_space<vmem>>, vector<16x32xf32>
    %c0_4 = arith.constant 0 : index
    %c0_5 = arith.constant 0 : index
    %5 = vector.load %arg4[%c0_4, %c0_5] : memref<32x32xf32, #tpu.memory_space<vmem>>, vector<32x32xf32>
    %cst = arith.constant dense<0.000000e+00> : vector<16x32xf32>
    %6 = tpu.matmul %4, %5, %cst {dimension_numbers = #tpu.dot_dimension_numbers<[1], [0], [0], [1], [0, 0, 1, 1], [], []>} : vector<16x32xf32>, vector<32x32xf32>, vector<16x32xf32> -> vector<16x32xf32>
    %7 = arith.addf %3, %6 : vector<16x32xf32>
    %c0_6 = arith.constant 0 : index
    %c0_7 = arith.constant 0 : index
    %8 = vector.load %arg7[%c0_6, %c0_7] : memref<16x32xf32, #tpu.memory_space<vmem>>, vector<16x32xf32>
    tpu.vector_store %arg7[%c0_6, %c0_7], %7 {strides = array<i32>} : memref<16x32xf32, #tpu.memory_space<vmem>>, vector<16x32xf32>,
    %c0_i32_8 = arith.constant 0 : i32
    %9 = arith.cmpi eq, %arg2, %c0_i32_8 : i32
    %10 = arith.extui %9 : i1 to i32
    %c0_i32_9 = arith.constant 0 : i32
    %11 = arith.cmpi ne, %10, %c0_i32_9 : i32
    scf.if %11 {
      %c0_10 = arith.constant 0 : index
      %c0_11 = arith.constant 0 : index
      %12 = vector.load %arg7[%c0_10, %c0_11] : memref<16x32xf32, #tpu.memory_space<vmem>>, vector<16x32xf32>
      %c0_12 = arith.constant 0 : index
      %c0_13 = arith.constant 0 : index
      %13 = vector.load %arg5[%c0_12, %c0_13] : memref<1x32xf32, #tpu.memory_space<vmem>>, vector<1x32xf32>
      %14 = vector.broadcast %13 : vector<1x32xf32> to vector<16x32xf32>
      %15 = arith.addf %12, %14 : vector<16x32xf32>
      %c0_14 = arith.constant 0 : index
      %c0_15 = arith.constant 0 : index
      %16 = vector.load %arg6[%c0_14, %c0_15] : memref<16x32xf32, #tpu.memory_space<vmem>>, vector<16x32xf32>
      tpu.vector_store %arg6[%c0_14, %c0_15], %15 {strides = array<i32>} : memref<16x32xf32, #tpu.memory_space<vmem>>, vector<16x32xf32>,
    } else {
    }
    return
  }
  func.func @transform_0(%arg0: i32, %arg1: i32, %arg2: i32) -> (i32, i32) {
    %c0_i32 = arith.constant 0 : i32
    return %arg0, %arg2 : i32, i32
  }
  func.func @transform_1(%arg0: i32, %arg1: i32, %arg2: i32) -> (i32, i32) {
    %c0_i32 = arith.constant 0 : i32
    return %arg2, %arg1 : i32, i32
  }
  func.func @transform_2(%arg0: i32, %arg1: i32, %arg2: i32) -> (i32, i32) {
    %c0_i32 = arith.constant 0 : i32
    %c0_i32_0 = arith.constant 0 : i32
    return %c0_i32, %arg1 : i32, i32
  }
  func.func @transform_3(%arg0: i32, %arg1: i32, %arg2: i32) -> (i32, i32) {
    %c0_i32 = arith.constant 0 : i32
    return %arg0, %arg1 : i32, i32
  }
}

</mosaic_0001>

<bundles_post_ra>
// kernel: tpu_custom_call.1
= control target key start
LH: loop header
LB: loop body
LE: loop exit
PB: predicated region body
PF: predicated region fallthrough
CT: control target
= control target key end

     0   :  { %8 = vsyncpa [#allocation4], 0  ;;  %s366_s0 = inlined_call_operand.hbm [shape: f32[16,32], index: 0, kind: input, shape index: {}]   ;;  %s367_s1 = inlined_call_operand.hbm [shape: f32[32,32], index: 1, kind: input, shape index: {}]   ;;  %s368_s2 = inlined_call_operand.vmem [shape: f32[1,32], index: 2, kind: input, shape index: {}]   ;;  %s369_s3 = inlined_call_operand.hbm [shape: f32[16,32], index: 3, kind: output, shape index: {}]  }
   0x1   :  { %9 = vsyncpa [#allocation7], 0 }
   0x2   :  { %10 = vsyncpa [#allocation5], 0  ;;  %s284_s12 = smov [#allocation3]   ;;  %s212_s16 = scalar_lea.hbm %s366_s0, 256 }
   0x3   :  { %s16_s13 = sshll.u32 %s284_s12, 4  ;;  %p213_p0 = scmp.ne.s32.totalorder %s366_s0, %s212_s16  ;;  %s17_s13 = int_to_ptr.vmem [resolvable:$true] %s16_s13 }
   0x4   :  { %p216_p1 = scmp.lt.u32.totalorder %s212_s16, %s366_s0 }
   0x6   :  { %p218_p2 = pnand %p216_p1, %p213_p0 }
   0x8   :  { %221 = shalt.err (!%p218_p2)
}
   0x9   :  { %s222_s21 = scalar_lea.vmem %s17_s13, 256  ;;  %p227_p4 = scmp.lt.s32.totalorder %s17_s13, %s17_s13 }
   0xa   :  { %p223_p3 = scmp.ne.s32.totalorder %s17_s13, %s222_s21  ;;  %p228_p5 = scmp.lt.s32.totalorder %s222_s21, %s222_s21 }
   0xc   :  { %p229_p6 = por %p228_p5, %p227_p4 }
   0xe   :  { %p230_p7 = pnand %p229_p6, %p223_p3 }
  0x10   :  { %233 = shalt.err (!%p230_p7)
}
  0x11   :  { %s285_s22 = smov 128   ;;  %s286_s23 = smov 8  }
  0x12   :  { %22 = dma.hbm_to_vmem [thread:$0]  %s366_s0, 256, %s17_s13, [#allocation4], %s285_s22, %s285_s22, %s286_s23  }
  0x13   :  { %s287_s26 = smov [#allocation6]   ;;  %s234_s30 = scalar_lea.hbm %s367_s1, 512 }
  0x14   :  { %s28_s27 = sshll.u32 %s287_s26, 4  ;;  %p235_p8 = scmp.ne.s32.totalorder %s367_s1, %s234_s30  ;;  %s29_s27 = int_to_ptr.vmem [resolvable:$true] %s28_s27 }
  0x15   :  { %p238_p9 = scmp.lt.u32.totalorder %s234_s30, %s367_s1 }
  0x17   :  { %p240_p10 = pnand %p238_p9, %p235_p8 }
  0x19   :  { %243 = shalt.err (!%p240_p10)
}
  0x1a   :  { %s244_s8 = scalar_lea.vmem %s29_s27, 512  ;;  %p249_p12 = scmp.lt.s32.totalorder %s29_s27, %s29_s27 }
  0x1b   :  { %p245_p11 = scmp.ne.s32.totalorder %s29_s27, %s244_s8  ;;  %p250_p13 = scmp.lt.s32.totalorder %s244_s8, %s244_s8 }
  0x1d   :  { %p251_p0 = por %p250_p13, %p249_p12 }
  0x1f   :  { %p252_p1 = pnand %p251_p0, %p245_p11 }
  0x21   :  { %255 = shalt.err (!%p252_p1)
}
  0x22   :  { %34 = dma.hbm_to_vmem [thread:$0]  %s367_s1, 512, %s29_s27, [#allocation7], %s285_s22, %s285_s22, %s286_s23  }
  0x23   :  { %278 = dma.done.wait [#allocation4], 256  }
  0x24   :  { %279 = vsyncadd [#allocation4], 4294967040 }
  0x25   :  { %280 = dma.done.wait [#allocation7], 512  }
  0x26   :  { %281 = vsyncadd [#allocation7], 4294966784  ;;  %vm47_vm0 = vcmask 261120   ;;  %v288_v0 = vmov 0.0   ;;  %v54_v1 = vld [vmem:[#allocation6] sm:$0xff]  ;;  %v55_v2 = vld [vmem:[#allocation6 + $0x8] sm:$0xff] }
  0x27   :  { %49 = vst.msk [vmem:[#allocation2 + $0x8] sm:$0xff] %vm47_vm0, %v288_v0  ;;  %48 = vst.msk [vmem:[#allocation2] sm:$0xff] %vm47_vm0, %v288_v0  ;;  %v56_v3 = vld [vmem:[#allocation6 + $0x10] sm:$0xff]  ;;  %v198_v4 = vpack.c.bf16 %v55_v2, %v54_v1  ;;  %v57_v5 = vld [vmem:[#allocation6 + $0x18] sm:$0xff]  ;;  %s289_s11 = smov [#allocation8]  }
  0x28   :  { %v52_v6 = vld [vmem:[#allocation3] sm:$0xff]  ;;  %v202_v7 = vpack.c.bf16 %v57_v5, %v56_v3  ;;  %v53_v8 = vld [vmem:[#allocation3 + $0x8] sm:$0xff]  ;;  %v180_v15 = vld [vmem:[%s368_s2] ss:$0 sm:$0xff]  ;;  %s165_s12 = sshll.u32 %s289_s11, 4  ;;  %s166_s12 = int_to_ptr.vmem [resolvable:$true] %s165_s12 }
  0x29   :  { %195 = vmatprep.mubr.msk.f32.mxu0 %vm47_vm0, %v52_v6  ;;  %199 = vmatprep.subr.bf16.mxu0 %v198_v4  ;;  %s256_s13 = scalar_lea.vmem %s166_s12, 256  ;;  %p261_p3 = scmp.lt.s32.totalorder %s166_s12, %s166_s12 }
  0x2a   :  { %201 = vmatpush3.bf16.msra.mxu0 %v198_v4  ;;  %p257_p2 = scmp.ne.s32.totalorder %s166_s12, %s256_s13  ;;  %p262_p4 = scmp.lt.s32.totalorder %s256_s13, %s256_s13 }
  0x2b   :  { %203 = vmatprep.subr.bf16.mxu0 %v202_v7 }
  0x2c   :  { %p263_p5 = por %p262_p4, %p261_p3 }
  0x2e   :  { %205 = vmatpush3.bf16.msra.mxu0 %v202_v7  ;;  %v51_v9 = vld [vmem:[#allocation2 + $0x8] sm:$0xff]  ;;  %v50_v10 = vld [vmem:[#allocation2] sm:$0xff]  ;;  %p264_p6 = pnand %p263_p5, %p257_p2 }
  0x31   :  { %196 = vmatmul.mubr.msk.f32.vlgmr.msra.gmra.mrb[0].mxu0 %vm47_vm0, %v53_v8 }
 0x104   :  { %v197_v11 = vpop.f32.mrb[0].mxu0 }
 0x105   :  { %v141_v12 = vadd.f32 %v197_v11, %v51_v9  ;;  %v131_v13 = vpop.f32.mrb[1].mxu0 }
 0x106   :  { %v140_v14 = vadd.f32 %v131_v13, %v50_v10 }
 0x107   :  { %143 = vst.msk [vmem:[#allocation2 + $0x8] sm:$0xff] %vm47_vm0, %v141_v12 }
 0x108   :  { %142 = vst.msk [vmem:[#allocation2] sm:$0xff] %vm47_vm0, %v140_v14 }
 0x10e   :  { %v148_v16 = vld [vmem:[#allocation2 + $0x8] sm:$0xff] }
 0x10f   :  { %v147_v17 = vld [vmem:[#allocation2] sm:$0xff]  ;;  %v157_v18 = vadd.f32 %v180_v15, %v148_v16 }
 0x110   :  { %v156_v19 = vadd.f32 %v180_v15, %v147_v17 }
 0x111   :  { %159 = vst.msk [vmem:[#allocation8 + $0x8] sm:$0xff] %vm47_vm0, %v157_v18 }
 0x112   :  { %158 = vst.msk [vmem:[#allocation8] sm:$0xff] %vm47_vm0, %v156_v19 }
 0x113   :  { %267 = shalt.err (!%p264_p6)
}
 0x114   :  { %s268_s15 = scalar_lea.hbm %s369_s3, 256 }
 0x115   :  { %p269_p7 = scmp.ne.s32.totalorder %s369_s3, %s268_s15  ;;  %p272_p8 = scmp.lt.u32.totalorder %s268_s15, %s369_s3 }
 0x117   :  { %p274_p9 = pnand %p272_p8, %p269_p7 }
 0x119   :  { %277 = shalt.err (!%p274_p9)
}
 0x11a   :  { %171 = dma.vmem_to_hbm [thread:$0]  %s166_s12, 256, %s369_s3, [#allocation5], %s285_s22, %s285_s22, %s286_s23  }
 0x11b   :  { %282 = dma.done.wait [#allocation5], 256  }
 0x11c   :  { %283 = vsyncadd [#allocation5], 4294967040 }
 0x11d   :  { %175 = vsyncpa [#allocation4], 1 }
 0x11e   :  { %176 = vsyncpa [#allocation7], 1 }
 0x11f   :  { %177 = vsyncpa [#allocation5], 1 }

</bundles_post_ra>
